<compile_context>
chip_gen: v5e
topology: v5e:2x2
jax: 0.10.0
libtpu: 0.0.40
codegen_flags: <defaults>
</compile_context>

<pallas_src>
import functools

import jax
import jax.numpy as jnp
from jax.experimental import pallas as pl
from jax.experimental.pallas import tpu as pltpu


def _physical_vmem_bytes() -> int:
    try:
        return int(pltpu.get_tpu_info().vmem_capacity_bytes)
    except Exception:
        return 64 * 1024 * 1024  # conservative fallback (v7x per-TC VMEM)


def _vmem_limit(need_bytes: int, cap: int) -> int:
    # 25% margin over the per-step footprint estimate, floored at 8 MiB,
    # always capped below physical VMEM.
    return int(min(max(need_bytes * 5 // 4, 8 << 20), int(0.9 * cap)))


def _fc_attention(avg, mx, mn, w1a_ref, w1b_ref, w1c_ref, w2_ref):
    """Conv1x1(3C->C//r, no bias) split in torch.cat(avg|max|min) order,
    ReLU, Conv1x1(C//r->C, no bias), sigmoid. All on tiny (C,1) f32 vectors."""
    h = (jnp.dot(w1a_ref[...].astype(jnp.float32), avg,
                 preferred_element_type=jnp.float32)
         + jnp.dot(w1b_ref[...].astype(jnp.float32), mx,
                   preferred_element_type=jnp.float32)
         + jnp.dot(w1c_ref[...].astype(jnp.float32), mn,
                   preferred_element_type=jnp.float32))
    h = jnp.maximum(h, 0.0)                                   # (C//r, 1)
    logits = jnp.dot(w2_ref[...].astype(jnp.float32), h,
                     preferred_element_type=jnp.float32)      # (C, 1)
    return jax.nn.sigmoid(logits)                             # (C, 1) f32


# ----------------------------- fused whole-slab path ------------------------


def _fused_kernel(x_ref, w1a_ref, w1b_ref, w1c_ref, w2_ref, o_ref, *, inv_hw):
    x = x_ref[0]                                              # (C, hw) I/O dtype
    xs = x if x.dtype == jnp.float32 else x.astype(jnp.float32)
    avg = jnp.sum(xs, axis=-1, keepdims=True) * inv_hw        # f32 XLU reduce
    mx = jnp.max(x, axis=-1, keepdims=True).astype(jnp.float32)
    mn = jnp.min(x, axis=-1, keepdims=True).astype(jnp.float32)
    attn = _fc_attention(avg, mx, mn, w1a_ref, w1b_ref, w1c_ref, w2_ref)
    # Cast only the (C,1) attention vector; scale + store in the I/O dtype.
    o_ref[0] = (x * attn.astype(x.dtype)).astype(o_ref.dtype)


def _fused_call(x, w1a, w1b, w1c, w2, vmem_cap, fused_need):
    B, C, hw = x.shape
    hidden = w1a.shape[0]
    itemsize = jnp.dtype(x.dtype).itemsize
    w_hbm = int((w1a.size + w1b.size + w1c.size + w2.size)
                * jnp.dtype(w1a.dtype).itemsize)
    cost = pl.CostEstimate(
        flops=int(B * (4 * C * hw + 8 * hidden * C)),
        transcendentals=int(B * C),
        bytes_accessed=int(2 * B * C * hw * itemsize + w_hbm),
    )
    kernel = functools.partial(_fused_kernel, inv_hw=1.0 / hw)
    return pl.pallas_call(
        kernel,
        out_shape=jax.ShapeDtypeStruct((B, C, hw), x.dtype),
        grid_spec=pltpu.PrefetchScalarGridSpec(
            num_scalar_prefetch=0,
            grid=(B,),
            in_specs=[
                pl.BlockSpec((1, C, hw), lambda b: (b, 0, 0)),
                pl.BlockSpec((hidden, C), lambda b: (0, 0)),
                pl.BlockSpec((hidden, C), lambda b: (0, 0)),
                pl.BlockSpec((hidden, C), lambda b: (0, 0)),
                pl.BlockSpec((C, hidden), lambda b: (0, 0)),
            ],
            out_specs=pl.BlockSpec((1, C, hw), lambda b: (b, 0, 0)),
        ),
        compiler_params=pltpu.CompilerParams(
            dimension_semantics=("parallel",),
            vmem_limit_bytes=_vmem_limit(fused_need, vmem_cap),
        ),
        cost_estimate=cost,
    )(x, w1a, w1b, w1c, w2)


# ----------------------------- tiled two-pass path --------------------------


def _stats_kernel(x_ref, w1a_ref, w1b_ref, w1c_ref, w2_ref, attn_ref,
                  sum_sc, max_sc, min_sc, *, hw, tile_hw, inv_hw):
    t = pl.program_id(1)

    @pl.when(t == 0)
    def _():
        sum_sc[...] = jnp.zeros(sum_sc.shape, sum_sc.dtype)
        max_sc[...] = jnp.full(max_sc.shape, -jnp.inf, max_sc.dtype)
        min_sc[...] = jnp.full(min_sc.shape, jnp.inf, min_sc.dtype)

    xf = x_ref[0].astype(jnp.float32)                         # (C, tile_hw)
    if hw % tile_hw != 0:
        # Only the overhanging final tile carries invalid lanes; mask them.
        lane = jax.lax.broadcasted_iota(jnp.int32, xf.shape, 1)
        valid = (t * tile_hw + lane) < hw
        x_sum = jnp.where(valid, xf, 0.0)
        x_max = jnp.where(valid, xf, -jnp.inf)
        x_min = jnp.where(valid, xf, jnp.inf)
    else:
        x_sum = x_max = x_min = xf

    sum_sc[...] += jnp.sum(x_sum, axis=-1, keepdims=True)
    max_sc[...] = jnp.maximum(max_sc[...],
                              jnp.max(x_max, axis=-1, keepdims=True))
    min_sc[...] = jnp.minimum(min_sc[...],
                              jnp.min(x_min, axis=-1, keepdims=True))

    @pl.when(t == pl.num_programs(1) - 1)
    def _():
        attn_ref[0] = _fc_attention(sum_sc[...] * inv_hw, max_sc[...],
                                    min_sc[...], w1a_ref, w1b_ref, w1c_ref,
                                    w2_ref)


def _scale_kernel(attn_ref, x_ref, o_ref):
    x = x_ref[0]                                              # (C, tile_hw)
    o_ref[0] = (x * attn_ref[0].astype(x.dtype)).astype(o_ref.dtype)


def _tiled_call(x, w1a, w1b, w1c, w2, vmem_cap, tile_hw=None):
    B, C, hw = x.shape
    hidden = w1a.shape[0]
    itemsize = jnp.dtype(x.dtype).itemsize
    w_hbm = int((w1a.size + w1b.size + w1c.size + w2.size)
                * jnp.dtype(w1a.dtype).itemsize)
    w_f32 = int((w1a.size + w1b.size + w1c.size + w2.size) * 4)

    if tile_hw is None:
        budget = int(0.7 * vmem_cap)
        tile_hw = 256
        for cand in (2048, 1024, 512):   # >=512 lanes keeps ~85% HBM roofline
            if C * cand * (4 * itemsize + 4) + w_f32 + (4 << 20) <= budget:
                tile_hw = cand
                break
    nt = -(-hw // tile_hw)
    tile_bytes = C * tile_hw * itemsize

    # ---- pass 1: pooled stats + fc + sigmoid -> (B, C, 1) f32 attention ----
    # TODO(synk): on v7x with B == 1, also split this reduction across the two
    # TensorCores (per-core partial accumulators + combine).
    stats = functools.partial(_stats_kernel, hw=hw, tile_hw=tile_hw,
                              inv_hw=1.0 / hw)
    need1 = 2 * tile_bytes + C * tile_hw * 4 + w_f32 + w_hbm + 3 * C * 4 + (1 << 20)
    cost1 = pl.CostEstimate(
        flops=int(B * (3 * C * hw + 8 * hidden * C)),
        transcendentals=int(B * C),
        bytes_accessed=int(B * C * hw * itemsize + w_hbm + B * C * 4),
    )
    attn = pl.pallas_call(
        stats,
        out_shape=jax.ShapeDtypeStruct((B, C, 1), jnp.float32),
        grid_spec=pltpu.PrefetchScalarGridSpec(
            num_scalar_prefetch=0,
            grid=(B, nt),
            in_specs=[
                pl.BlockSpec((1, C, tile_hw), lambda b, t: (b, 0, t)),
                pl.BlockSpec((hidden, C), lambda b, t: (0, 0)),
                pl.BlockSpec((hidden, C), lambda b, t: (0, 0)),
                pl.BlockSpec((hidden, C), lambda b, t: (0, 0)),
                pl.BlockSpec((C, hidden), lambda b, t: (0, 0)),
            ],
            out_specs=pl.BlockSpec((1, C, 1), lambda b, t: (b, 0, 0)),
            scratch_shapes=[pltpu.VMEM((C, 1), jnp.float32)] * 3,
        ),
        compiler_params=pltpu.CompilerParams(
            dimension_semantics=("parallel", "arbitrary"),
            vmem_limit_bytes=_vmem_limit(need1, vmem_cap),
        ),
        cost_estimate=cost1,
    )(x, w1a, w1b, w1c, w2)

    # ---- pass 2: broadcast channel scale over fully parallel tiles ---------
    need2 = 4 * tile_bytes + C * 4 + (1 << 20)
    cost2 = pl.CostEstimate(
        flops=int(B * C * hw),
        transcendentals=0,
        bytes_accessed=int(2 * B * C * hw * itemsize + B * C * 4),
    )
    out = pl.pallas_call(
        _scale_kernel,
        out_shape=jax.ShapeDtypeStruct((B, C, hw), x.dtype),
        grid_spec=pltpu.PrefetchScalarGridSpec(
            num_scalar_prefetch=0,
            grid=(B, nt),
            in_specs=[
                pl.BlockSpec((1, C, 1), lambda b, t: (b, 0, 0)),
                pl.BlockSpec((1, C, tile_hw), lambda b, t: (b, 0, t)),
            ],
            out_specs=pl.BlockSpec((1, C, tile_hw), lambda b, t: (b, 0, t)),
        ),
        compiler_params=pltpu.CompilerParams(
            dimension_semantics=("parallel", "parallel"),
            vmem_limit_bytes=_vmem_limit(need2, vmem_cap),
        ),
        cost_estimate=cost2,
    )(attn, x)
    return out


# ----------------------------- public wrapper -------------------------------


def channel_attention(x_nchw, w1, w2, *, force_tiled=False, tile_hw=None):
    """ChannelAttention forward. x: (B,C,H,W); w1: (C//r, 3C); w2: (C, C//r).
    Only floating-point inputs are supported (the pooling path assumes +/-inf
    identities)."""
    B, C, H, W = x_nchw.shape
    hw = H * W
    # No spatial padding: the (B, C, hw) view is passed straight through, so
    # there is no extra pad/slice HBM pass even when hw % 128 != 0.
    x = x_nchw.reshape(B, C, hw)
    # fc1's weight pre-split along its input dim in torch.cat(avg|max|min) order.
    w1a, w1b, w1c = w1[:, :C], w1[:, C:2 * C], w1[:, 2 * C:]

    itemsize = jnp.dtype(x.dtype).itemsize
    slab_bytes = C * hw * itemsize
    w_f32 = int((w1.size + w2.size) * 4)
    vmem_cap = _physical_vmem_bytes()

    # Fused-path footprint: double-buffered in + out slabs, weights, the f32
    # sum temporary (only when the I/O dtype is not already f32), headroom.
    f32_tmp = 0 if x.dtype == jnp.float32 else C * hw * 4
    fused_need = 4 * slab_bytes + w_f32 + f32_tmp + (2 << 20)

    if force_tiled or fused_need > int(0.8 * vmem_cap):
        out = _tiled_call(x, w1a, w1b, w1c, w2, vmem_cap, tile_hw=tile_hw)
    else:
        out = _fused_call(x, w1a, w1b, w1c, w2, vmem_cap, fused_need)
    return out.reshape(B, C, H, W)


def channel_attention_ref(x, w1, w2):
    # Pure-JAX reference matching the PyTorch forward semantics.
    xf = x.astype(jnp.float32)
    avg = jnp.mean(xf, axis=(2, 3))                      # (B, C)
    mx = jnp.max(xf, axis=(2, 3))
    mn = jnp.min(xf, axis=(2, 3))                        # == -maxpool(-x)
    pooled = jnp.concatenate([avg, mx, mn], axis=1)      # (B, 3C)
    h = jnp.maximum(pooled @ w1.astype(jnp.float32).T, 0.0)
    attn = jax.nn.sigmoid(h @ w2.astype(jnp.float32).T)  # (B, C)
    return (xf * attn[:, :, None, None]).astype(x.dtype)


if __name__ == "__main__":
    B, C, H, W = 2, 32, 16, 16
    reduction = 16
    hidden = C // reduction  # 2

    key = jax.random.PRNGKey(0)
    kx, k1, k2 = jax.random.split(key, 3)

    x = jax.random.normal(kx, (B, C, H, W), dtype=jnp.float32)
    # Deterministic Kaiming-ish init for the two bias-free 1x1 conv weights.
    w1 = jax.random.normal(k1, (hidden, 3 * C), dtype=jnp.float32) * (2.0 / (3 * C)) ** 0.5
    w2 = jax.random.normal(k2, (C, hidden), dtype=jnp.float32) * (2.0 / hidden) ** 0.5

    ref = channel_attention_ref(x, w1, w2)

    # Fused whole-slab path (the fast path for shapes that fit VMEM).
    out = jax.block_until_ready(channel_attention(x, w1, w2))
    assert out.shape == (B, C, H, W)
    assert jnp.allclose(out, ref, atol=1e-4, rtol=1e-4), "fused path mismatch"

    # Also exercise the large-feature-map fallback (two-pass tiled) here with a
    # small forced tile so its correctness is verified on the same inputs.
    out_t = jax.block_until_ready(
        channel_attention(x, w1, w2, force_tiled=True, tile_hw=128))
    assert jnp.allclose(out_t, ref, atol=1e-4, rtol=1e-4), "tiled path mismatch"

    print("KERNEL_OK")
</pallas_src>

<mosaic_0001>
module attributes {stable_mosaic.version = 11 : i64} {
  func.func @_fused_kernel(%arg0: i32, %arg1: memref<1x32x256xf32, #tpu.memory_space<vmem>>, %arg2: memref<2x32xf32, #tpu.memory_space<vmem>>, %arg3: memref<2x32xf32, #tpu.memory_space<vmem>>, %arg4: memref<2x32xf32, #tpu.memory_space<vmem>>, %arg5: memref<32x2xf32, #tpu.memory_space<vmem>>, %arg6: memref<1x32x256xf32, #tpu.memory_space<vmem>>) attributes {dimension_semantics = [#tpu.dimension_semantics<parallel>], iteration_bounds = array<i64: 2>, scalar_prefetch = 0 : i64, scratch_operands = 0 : i64, tpu.core_type = #tpu.core_type<tc>, window_params = [{transform_indices = @transform_0, window_bounds = array<i64: 1, 32, 256>}, {pipeline_mode = #tpu.pipeline_mode<synchronous>, transform_indices = @transform_1, window_bounds = array<i64: 2, 32>}, {pipeline_mode = #tpu.pipeline_mode<synchronous>, transform_indices = @transform_2, window_bounds = array<i64: 2, 32>}, {pipeline_mode = #tpu.pipeline_mode<synchronous>, transform_indices = @transform_3, window_bounds = array<i64: 2, 32>}, {pipeline_mode = #tpu.pipeline_mode<synchronous>, transform_indices = @transform_4, window_bounds = array<i64: 32, 2>}, {transform_indices = @transform_5, window_bounds = array<i64: 1, 32, 256>}]} {
    %c0 = arith.constant 0 : index
    %c0_0 = arith.constant 0 : index
    %c0_1 = arith.constant 0 : index
    %0 = vector.load %arg1[%c0, %c0_0, %c0_1] : memref<1x32x256xf32, #tpu.memory_space<vmem>>, vector<1x32x256xf32>
    %1 = vector.shape_cast %0 : vector<1x32x256xf32> to vector<32x256xf32>
    %cst = arith.constant dense<0.000000e+00> : vector<32xf32>
    %2 = vector.multi_reduction <add>, %1, %cst [1] : vector<32x256xf32> to vector<32xf32>
    %3 = vector.shape_cast %2 : vector<32xf32> to vector<32x1xf32>
    %cst_2 = arith.constant 3.906250e-03 : f32
    %4 = vector.broadcast %cst_2 : f32 to vector<32x1xf32>
    %5 = arith.mulf %3, %4 : vector<32x1xf32>
    %cst_3 = arith.constant dense<0xFF800000> : vector<32xf32>
    %6 = vector.multi_reduction <maximumf>, %1, %cst_3 [1] : vector<32x256xf32> to vector<32xf32>
    %7 = vector.shape_cast %6 : vector<32xf32> to vector<32x1xf32>
    %cst_4 = arith.constant dense<0x7F800000> : vector<32xf32>
    %8 = vector.multi_reduction <minimumf>, %1, %cst_4 [1] : vector<32x256xf32> to vector<32xf32>
    %9 = vector.shape_cast %8 : vector<32xf32> to vector<32x1xf32>
    %c0_5 = arith.constant 0 : index
    %c0_6 = arith.constant 0 : index
    %10 = vector.load %arg2[%c0_5, %c0_6] : memref<2x32xf32, #tpu.memory_space<vmem>>, vector<2x32xf32>
    %cst_7 = arith.constant dense<0.000000e+00> : vector<2x1xf32>
    %11 = tpu.matmul %10, %5, %cst_7 {dimension_numbers = #tpu.dot_dimension_numbers<[1], [0], [0], [1], [0, 0, 1, 1], [], []>} : vector<2x32xf32>, vector<32x1xf32>, vector<2x1xf32> -> vector<2x1xf32>
    %c0_8 = arith.constant 0 : index
    %c0_9 = arith.constant 0 : index
    %12 = vector.load %arg3[%c0_8, %c0_9] : memref<2x32xf32, #tpu.memory_space<vmem>>, vector<2x32xf32>
    %cst_10 = arith.constant dense<0.000000e+00> : vector<2x1xf32>
    %13 = tpu.matmul %12, %7, %cst_10 {dimension_numbers = #tpu.dot_dimension_numbers<[1], [0], [0], [1], [0, 0, 1, 1], [], []>} : vector<2x32xf32>, vector<32x1xf32>, vector<2x1xf32> -> vector<2x1xf32>
    %14 = arith.addf %11, %13 : vector<2x1xf32>
    %c0_11 = arith.constant 0 : index
    %c0_12 = arith.constant 0 : index
    %15 = vector.load %arg4[%c0_11, %c0_12] : memref<2x32xf32, #tpu.memory_space<vmem>>, vector<2x32xf32>
    %cst_13 = arith.constant dense<0.000000e+00> : vector<2x1xf32>
    %16 = tpu.matmul %15, %9, %cst_13 {dimension_numbers = #tpu.dot_dimension_numbers<[1], [0], [0], [1], [0, 0, 1, 1], [], []>} : vector<2x32xf32>, vector<32x1xf32>, vector<2x1xf32> -> vector<2x1xf32>
    %17 = arith.addf %14, %16 : vector<2x1xf32>
    %cst_14 = arith.constant 0.000000e+00 : f32
    %18 = vector.broadcast %cst_14 : f32 to vector<2x1xf32>
    %19 = arith.maximumf %17, %18 : vector<2x1xf32>
    %c0_15 = arith.constant 0 : index
    %c0_16 = arith.constant 0 : index
    %20 = vector.load %arg5[%c0_15, %c0_16] : memref<32x2xf32, #tpu.memory_space<vmem>>, vector<32x2xf32>
    %cst_17 = arith.constant dense<0.000000e+00> : vector<32x1xf32>
    %21 = tpu.matmul %20, %19, %cst_17 {dimension_numbers = #tpu.dot_dimension_numbers<[1], [0], [0], [1], [0, 0, 1, 1], [], []>} : vector<32x2xf32>, vector<2x1xf32>, vector<32x1xf32> -> vector<32x1xf32>
    %22 = arith.negf %21 : vector<32x1xf32>
    %23 = math.exp %22 : vector<32x1xf32>
    %cst_18 = arith.constant 1.000000e+00 : f32
    %24 = vector.broadcast %cst_18 : f32 to vector<32x1xf32>
    %25 = arith.addf %24, %23 : vector<32x1xf32>
    %26 = arith.divf %24, %25 : vector<32x1xf32>
    %27 = vector.broadcast %26 : vector<32x1xf32> to vector<32x256xf32>
    %28 = arith.mulf %1, %27 : vector<32x256xf32>
    %c0_19 = arith.constant 0 : index
    %c0_20 = arith.constant 0 : index
    %c0_21 = arith.constant 0 : index
    %29 = vector.load %arg6[%c0_19, %c0_20, %c0_21] : memref<1x32x256xf32, #tpu.memory_space<vmem>>, vector<1x32x256xf32>
    %30 = vector.shape_cast %29 : vector<1x32x256xf32> to vector<32x256xf32>
    %31 = vector.shape_cast %28 : vector<32x256xf32> to vector<1x32x256xf32>
    tpu.vector_store %arg6[%c0_19, %c0_20, %c0_21], %31 {strides = array<i32>} : memref<1x32x256xf32, #tpu.memory_space<vmem>>, vector<1x32x256xf32>,
    return
  }
  func.func @transform_0(%arg0: i32) -> (i32, i32, i32) {
    %c0_i32 = arith.constant 0 : i32
    %c0_i32_0 = arith.constant 0 : i32
    %c0_i32_1 = arith.constant 0 : i32
    return %arg0, %c0_i32, %c0_i32_0 : i32, i32, i32
  }
  func.func @transform_1(%arg0: i32) -> (i32, i32) {
    %c0_i32 = arith.constant 0 : i32
    %c0_i32_0 = arith.constant 0 : i32
    %c0_i32_1 = arith.constant 0 : i32
    return %c0_i32, %c0_i32_0 : i32, i32
  }
  func.func @transform_2(%arg0: i32) -> (i32, i32) {
    %c0_i32 = arith.constant 0 : i32
    %c0_i32_0 = arith.constant 0 : i32
    %c0_i32_1 = arith.constant 0 : i32
    return %c0_i32, %c0_i32_0 : i32, i32
  }
  func.func @transform_3(%arg0: i32) -> (i32, i32) {
    %c0_i32 = arith.constant 0 : i32
    %c0_i32_0 = arith.constant 0 : i32
    %c0_i32_1 = arith.constant 0 : i32
    return %c0_i32, %c0_i32_0 : i32, i32
  }
  func.func @transform_4(%arg0: i32) -> (i32, i32) {
    %c0_i32 = arith.constant 0 : i32
    %c0_i32_0 = arith.constant 0 : i32
    %c0_i32_1 = arith.constant 0 : i32
    return %c0_i32, %c0_i32_0 : i32, i32
  }
  func.func @transform_5(%arg0: i32) -> (i32, i32, i32) {
    %c0_i32 = arith.constant 0 : i32
    %c0_i32_0 = arith.constant 0 : i32
    %c0_i32_1 = arith.constant 0 : i32
    return %arg0, %c0_i32, %c0_i32_0 : i32, i32, i32
  }
}

</mosaic_0001>

<bundles_post_ra>
// kernel: tpu_custom_call.1
= control target key start
LH: loop header
LB: loop body
LE: loop exit
PB: predicated region body
PF: predicated region fallthrough
CT: control target
= control target key end

     0   :  { %10 = vsyncpa [#allocation3], 0  ;;  %s1054_s0 = inlined_call_operand.hbm [shape: f32[2,32,256], index: 0, kind: input, shape index: {}]   ;;  %s1055_s1 = inlined_call_operand.vmem [shape: f32[2,32], index: 1, kind: input, shape index: {}]   ;;  %s1056_s2 = inlined_call_operand.vmem [shape: f32[2,32], index: 2, kind: input, shape index: {}]   ;;  %s1057_s3 = inlined_call_operand.vmem [shape: f32[2,32], index: 3, kind: input, shape index: {}]   ;;  %s1058_s4 = inlined_call_operand.vmem [shape: f32[32,2], index: 4, kind: input, shape index: {}]   ;;  %s1059_s5 = inlined_call_operand.hbm [shape: f32[2,32,256], index: 5, kind: output, shape index: {}]  }
   0x1   :  { %12 = vsyncpa [#allocation3 + $0x1], 0 }
   0x2   :  { %13 = vsyncpa [#allocation4], 0 }
   0x3   :  { %15 = vsyncpa [#allocation4 + $0x1], 0  ;;  %s851_s18 = smov 0   ;;  %s853_s19 = smov 0  }
   0x4   :  { %s855_s20 = smov 0   ;;  %s857_s21 = smov 0  }
   0x5 LB: > { %s872_s22 = sadd.s32 4294967295, %s814_s21   ;;  %s619_s23 = sadd.s32 4294967294, %s814_s21   ;;  %s814_s21 = sphi %s857_s21, %s1069_s21   ;;  %s810_s20 = sphi %s855_s20, %s1068_s20   ;;  %s806_s19 = sphi %s853_s19, %s1067_s19   ;;  %s802_s18 = sphi %s851_s18, %s1066_s18  }
   0x6   : > { %s876_s24 = sadd.s32 1, %s814_s21   ;;  %s28_s25 = sadd.s32 1, %s810_s20 }
   0x7   : > { %s25_s26 = ssub.s32 %s814_s21, %s876_s24  ;;  %p35_p0 = scmp.ne.s32.totalorder %s810_s20, %s806_s19 }
   0x8   : > { %p26_p1 = scmp.eq.s32.totalorder %s25_s26, 0  ;;  %p36_p2 = scmp.eq.s32.totalorder %s814_s21, 0 }
   0x9   : > { %p41_p3 = scmp.ne.s32.totalorder %s806_s19, %s802_s18  ;;  %p42_p4 = scmp.eq.s32.totalorder %s872_s22, 0 }
   0xa   : > { %s888_s27 = scalar_select %p26_p1, %s810_s20, %s28_s25  }
   0xb   : > { %p890_p5 = por %p36_p2, %p35_p0  ;;  %p894_p6 = por %p42_p4, %p41_p3 }
   0xc   : > { %p149_p7 = scmp.eq.s32.totalorder %s872_s22, 1  ;;  %p155_p8 = scmp.eq.s32.totalorder %s619_s23, 1 }
   0xd   : > { %p660_p10 = scmp.lt.s32.totalorder %s814_s21, 2  ;;  %s187_s7 = sand.u32 1, %s810_s20  }
   0xe   : > { %p901_p11 = por %p149_p7, %p35_p0  ;;  %p905_p12 = por %p155_p8, %p41_p3 }
   0xf   : > { %s645_s8 = sshll.u32 %s814_s21, 6  ;;  %s622_s9 = sshll.u32 %s187_s7, 6 }
  0x10   : > { %s196_s12 = scalar_lea.hbm %s1054_s0, %s645_s8  ;;  %s191_s14 = scalar_lea.vmem [#allocation2], %s622_s9 }
  0x11   : > { %s197_s13 = sshll.u32 %s196_s12, 4  ;;  %s199_s15 = sshll.u32 %s191_s14, 4  ;;  %s198_s13 = int_to_ptr.hbm [resolvable:$true] %s197_s13  ;;  %s200_s15 = int_to_ptr.vmem [resolvable:$true] %s199_s15 }
  0x12   : > { %p916_p13 = pnand %p660_p10, %p890_p5  ;;  %p625_p0 = scmp.ge.s32.totalorder %s814_s21, 1 }
  0x13   : > { %p207_p1 = scmp.lt.s32.totalorder %s814_s21, 3  ;;  %s188_s17 = scalar_lea.sflag [#allocation3], %s187_s7 }
  0x14   : > { %s718_s23 = sshra.s32 %s198_s13, 4  ;;  %p722_p3 = pneg %p916_p13  ;;  %s719_s23 = int_to_ptr.hbm [resolvable:$true] %s718_s23 }
  0x15   : > { %s720_s25 = scalar_lea.hbm %s719_s23, 64  ;;  %s725_s28 = scalar_lea.hbm %s1054_s0, 128 }
  0x16   : > { %p721_p2 = scmp.ne.s32.totalorder %s719_s23, %s720_s25  ;;  %p726_p5 = scmp.lt.s32.totalorder %s719_s23, %s1054_s0 }
  0x17   : > { %p727_p8 = scmp.lt.s32.totalorder %s725_s28, %s720_s25 }
  0x18   : > { %p723_p4 = pnand %p722_p3, %p721_p2 }
  0x19   : > { %p728_p10 = por %p727_p8, %p726_p5 }
  0x1a   : > { %p724_p7 = pneg %p723_p4 }
  0x1c   : > { %p729_p9 = pnand %p728_p10, %p724_p7 }
  0x1e   : > { %732 = shalt.err (!%p729_p9)
}
  0x1f   : > { %s816_s7 = smov 256   ;;  %s817_s11 = smov 16  }
  0x20   : > { %655 = dma.hbm_to_vmem [thread:$0]  (!%p916_p13), %s198_s13, 1024, %s200_s15, %s188_s17, %s816_s7, %s816_s7, %s817_s11  }
  0x21   : > { %p208_p2 = pnand %p625_p0, %p207_p1 }
  0x22   : > { %s937_s12 = sand.u32 (!%p208_p2), 1, %s806_s19  }
  0x23   : > { %211 = sbr.rel (%p208_p2) target bundleno = 603 (0x25b), region = 40  ;;  %s626_s14 = sshll.u32 (!%p208_p2), %s937_s12, 6 }
  0x24   : > { %s214_s23 = scalar_lea.sflag (!%p208_p2), [#allocation3], %s937_s12  ;;  %s217_s25 = scalar_lea.vmem (!%p208_p2), [#allocation2], %s626_s14 }
  0x28   : > { %793 = dma.done.wait (%p894_p6), %s214_s23, 1024  }
  0x29   : > { %795 = vsyncadd (%p894_p6), %s214_s23, 4294966272  ;;  %v947_v0 = vld [vmem:[%s217_s25 + $0x30] sm:$0xff]  ;;  %v949_v1 = vld [vmem:[%s217_s25 + $0x38] sm:$0xff]  ;;  %vm295_vm0 = vcmask 261120   ;;  %vm385_vm1 = vcmask 1041408   ;;  %vm372_vm2 = vcmask 15360  }
  0x2a   : > { %v951_v2 = vld [vmem:[%s217_s25 + $0x20] sm:$0xff]  ;;  %v290_v3 = vmin.f32 %v947_v0, %v949_v1  ;;  %v955_v4 = vld [vmem:[%s217_s25 + $0x28] sm:$0xff]  ;;  %v278_v5 = vmax.f32 %v947_v0, %v949_v1  ;;  %v961_v7 = vld [vmem:[%s217_s25 + $0x10] sm:$0xff]  ;;  %v262_v9 = vadd.f32 %v949_v1, %v947_v0  ;;  %v818_v49 = vmov 0   ;;  %s244_s29 = scalar_lea.vmem [#allocation5], %s626_s14  ;;  %s646_s13 = sshll.u32 %s872_s22, 6 }
  0x2b   : > { %v287_v6 = vmin.f32 %v951_v2, %v955_v4  ;;  %v963_v8 = vld [vmem:[%s217_s25 + $0x18] sm:$0xff]  ;;  %v259_v11 = vadd.f32 %v955_v4, %v951_v2  ;;  %v971_v12 = vld [vmem:[%s217_s25] sm:$0xff]  ;;  %v973_v13 = vld [vmem:[%s217_s25 + $0x8] sm:$0xff]  ;;  %v275_v16 = vmax.f32 %v951_v2, %v955_v4  ;;  %699 = vset.pattern.permute.xlu0 %v818_v49  ;;  %700 = vset.pattern.permute.xlu1 %v818_v49  ;;  %s542_s17 = scalar_lea.hbm %s1059_s5, %s646_s13  ;;  %s543_s14 = sshll.u32 %s244_s29, 4  ;;  %s544_s14 = int_to_ptr.vmem [resolvable:$true] %s543_s14 }
  0x2c   : > { %291 = vmin.xlane.f32.xlu0 %v290_v3  ;;  %279 = vmax.xlane.f32.xlu2 %v278_v5  ;;  %v284_v10 = vmin.f32 %v961_v7, %v963_v8  ;;  %v256_v14 = vadd.f32 %v963_v8, %v961_v7  ;;  %v281_v15 = vmin.f32 %v971_v12, %v973_v13  ;;  %v342_v28 = vld [vmem:[%s1057_s3] sm:$0x3]  ;;  %v369_v46 = vld [vmem:[%s1058_s4 + $0x8] sm:$0xff]  ;;  %v370_v47 = vld [vmem:[%s1058_s4 + $0x10] sm:$0xff]  ;;  %s545_s22 = sshll.u32 %s542_s17, 4  ;;  %s531_s26 = scalar_lea.sflag [#allocation4], %s937_s12  ;;  %s546_s22 = int_to_ptr.hbm [resolvable:$true] %s545_s22 }
  0x2d   : > { %288 = vmin.xlane.f32.xlu1 %v287_v6  ;;  %v253_v17 = vadd.f32 %v973_v13, %v971_v12  ;;  %v269_v18 = vmax.f32 %v971_v12, %v973_v13  ;;  %v272_v19 = vmax.f32 %v961_v7, %v963_v8  ;;  %v293_v37 = vld [vmem:[%s1055_s1] sm:$0x3]  ;;  %v371_v48 = vld [vmem:[%s1058_s4 + $0x18] sm:$0xff]  ;;  %701 = vset.pattern.permute.xlu2 %v818_v49  ;;  %s762_s8 = sshra.s32 %s546_s22, 4  ;;  %s768_s7 = scalar_lea.hbm %s1059_s5, 128  ;;  %s763_s8 = int_to_ptr.hbm [resolvable:$true] %s762_s8 }
  0x2e   : > { %v294_v38 = vld [vmem:[%s1056_s2] sm:$0x3]  ;;  %s764_s28 = scalar_lea.hbm %s763_s8, 64  ;;  %p769_p0 = scmp.lt.s32.totalorder %s763_s8, %s1059_s5 }
  0x2f   : > { %v368_v45 = vld [vmem:[%s1058_s4] sm:$0xff]  ;;  %p765_p6 = scmp.ne.s32.totalorder %s763_s8, %s764_s28  ;;  %p770_p1 = scmp.lt.s32.totalorder %s768_s7, %s764_s28 }
  0x31   : > { %p766_p9 = pnand %p765_p6, %p901_p11  ;;  %p771_p3 = por %p770_p1, %p769_p0 }
  0x33   : > { %p767_p13 = pneg %p766_p9 }
  0x34   : > { %263 = vadd.xlane.f32.xlu0 %v262_v9  ;;  %285 = vmin.xlane.f32.xlu2 %v284_v10 }
  0x35   : > { %260 = vadd.xlane.f32.xlu1 %v259_v11  ;;  %p772_p4 = pnand %p771_p3, %p767_p13 }
  0x3c   : > { %257 = vadd.xlane.f32.xlu0 %v256_v14  ;;  %282 = vmin.xlane.f32.xlu2 %v281_v15 }
  0x3d   : > { %276 = vmax.xlane.f32.xlu1 %v275_v16 }
  0x44   : > { %254 = vadd.xlane.f32.xlu0 %v253_v17  ;;  %270 = vmax.xlane.f32.xlu2 %v269_v18 }
  0x45   : > { %273 = vmax.xlane.f32.xlu1 %v272_v19 }
  0x9f   : > { %v292_v20 = vpop.xlane.xlu0 %291  ;;  %v280_v21 = vpop.xlane.xlu2 %279 }
  0xa0   : > { %v289_v22 = vpop.xlane.xlu1 %288  ;;  %358 = vmatpush.msra.mxu2 %v292_v20  ;;  %311 = vmatpush.msra.mxu0 %v280_v21 }
  0xa2   : > { %359 = vmatpush.msra.mxu2 %v289_v22 }
  0xa7   : > { %v264_v23 = vpop.xlane.xlu0 %263  ;;  %v286_v24 = vpop.xlane.xlu2 %285 }
  0xa8   : > { %v261_v25 = vpop.xlane.xlu1 %260  ;;  %v268_v26 = vmul.f32 0.00390625, %v264_v23  ;;  %360 = vmatpush.msra.mxu2 %v286_v24 }
  0xa9   : > { %v267_v27 = vmul.f32 0.00390625, %v261_v25 }
  0xaa   : > { %334 = vmatpush.msra.mxu1 %v268_v26 }
  0xac   : > { %335 = vmatpush.msra.mxu1 %v267_v27 }
  0xaf   : > { %v258_v29 = vpop.xlane.xlu0 %257  ;;  %v283_v30 = vpop.xlane.xlu2 %282 }
  0xb0   : > { %v277_v31 = vpop.xlane.xlu1 %276  ;;  %v266_v32 = vmul.f32 0.00390625, %v258_v29  ;;  %361 = vmatpush.msra.mxu2 %v283_v30 }
  0xb1   : > { %312 = vmatpush.msra.mxu0 %v277_v31  ;;  %630 = vmatmul.msk.f32.vlgmr.msra.gmra.mxu2 %vm295_vm0, %v342_v28 }
  0xb2   : > { %336 = vmatpush.msra.mxu1 %v266_v32 }
  0xb7   : > { %v255_v33 = vpop.xlane.xlu0 %254  ;;  %v271_v36 = vpop.xlane.xlu2 %270 }
  0xb8   : > { %v274_v34 = vpop.xlane.xlu1 %273  ;;  %v265_v35 = vmul.f32 0.00390625, %v255_v33 }
  0xb9   : > { %313 = vmatpush.msra.mxu0 %v274_v34 }
  0xba   : > { %337 = vmatpush.msra.mxu1 %v265_v35 }
  0xbb   : > { %314 = vmatpush.msra.mxu0 %v271_v36  ;;  %629 = vmatmul.msk.f32.vlgmr.msra.gmra.mxu1 %vm295_vm0, %v293_v37 }
  0xbc   : > { %628 = vmatmul.msk.f32.vlgmr.msra.gmra.mxu0 %vm295_vm0, %v294_v38 }
 0x134   : > { %v363_v41 = vpop.f32.mrf.mxu2 }
 0x138   : > { %v339_v39 = vpop.f32.mrf.mxu1 }
 0x139   : > { %v316_v40 = vpop.f32.mrf.mxu0 }
 0x13a   : > { %v340_v42 = vadd.f32 %v339_v39, %v316_v40 }
 0x13c   : > { %v366_v43 = vadd.f32 %v363_v41, %v340_v42 }
 0x13e   : > { %v367_v44 = vmax.f32 %v366_v43, 0.0 }
 0x140   : > { %631 = vmatpush.msk.msrb.mxu0 %vm385_vm1, %v367_v44  ;;  %647 = vmatpush.msk.msra.mxu3 %vm385_vm1, %v367_v44 }
 0x141   : > { %632 = vmatmul.msk.f32.vlgmr.msrb.gmra.mxu0 %vm372_vm2, %v368_v45  ;;  %633 = vmatmul.msk.f32.vlgmr.msra.gmra.mxu3 %vm372_vm2, %v369_v46 }
 0x149   : > { %634 = vmatmul.msk.f32.gmra.mxu3 %vm372_vm2, %v370_v47 }
 0x151   : > { %635 = vmatmul.msk.f32.gmra.mxu3 %vm372_vm2, %v371_v48 }
 0x1be   : > { %v406_v50 = vpop.f32.mrf.mxu0 }
 0x1bf   : > { %v636_v51 = vmul.f32 -1.442695, %v406_v50 }
 0x1c1   : > { %702 = vpow2.f32 %v636_v51 }
 0x1c4   : > { %v409_v52 = vpop.f32.mrf.mxu3 }
 0x1c5   : > { %v637_v53 = vmul.f32 -1.442695, %v409_v52 }
 0x1c7   : > { %v703_v54 = vpop.eup %702  ;;  %704 = vpow2.f32 %v637_v53 }
 0x1c8   : > { %v430_v55 = vadd.f32 1.0, %v703_v54 }
 0x1ca   : > { %706 = vrcp.f32 %v430_v55  ;;  %vm439_vm3 = vweird.f32 %v430_v55  ;;  %v445_v3 = vand.u32 2147483648, %v430_v55  ;;  %v443_v10 = vand.u32 2147483647, %v430_v55 }
 0x1cc   : > { %v412_v56 = vpop.f32.mrf.mxu3  ;;  %v446_v17 = vor.u32 1.1754944e-38, %v445_v3  ;;  %vm444_vm6 = vcmp.eq.f32.partialorder %v443_v10, 8.507059e+37 }
 0x1cd   : > { %v705_v57 = vpop.eup %704  ;;  %v638_v58 = vmul.f32 -1.442695, %v412_v56 }
 0x1ce   : > { %v431_v59 = vadd.f32 1.0, %v705_v57 }
 0x1cf   : > { %708 = vpow2.f32 %v638_v58 }
 0x1d0   : > { %v707_v60 = vpop.eup %706  ;;  %710 = vrcp.f32 %v431_v59  ;;  %v460_v21 = vand.u32 2147483648, %v431_v59  ;;  %v458_v23 = vand.u32 2147483647, %v431_v59  ;;  %vm454_vm8 = vweird.f32 %v431_v59 }
 0x1d1   : > { %v435_v61 = vmul.f32 %v707_v60, %v430_v55  ;;  %vm440_vm4 = vweird.f32 %v707_v60 }
 0x1d2   : > { %vm441_vm5 = vmor %vm439_vm3, %vm440_vm4  ;;  %v461_v28 = vor.u32 1.1754944e-38, %v460_v21  ;;  %vm459_vm10 = vcmp.eq.f32.partialorder %v458_v23, 8.507059e+37 }
 0x1d3   : > { %v436_v62 = vsub.f32 1.0, %v435_v61 }
 0x1d4   : > { %v415_v63 = vpop.f32.mrf.mxu3 }
 0x1d5   : > { %v709_v5 = vpop.eup %708  ;;  %v639_v6 = vmul.f32 -1.442695, %v415_v63  ;;  %v437_v9 = vmul.f32 %v707_v60, %v436_v62 }
 0x1d6   : > { %v711_v11 = vpop.eup %710  ;;  %v432_v14 = vadd.f32 1.0, %v709_v5 }
 0x1d7   : > { %712 = vpow2.f32 %v639_v6  ;;  %v438_v15 = vadd.f32 %v707_v60, %v437_v9  ;;  %v450_v16 = vmul.f32 %v711_v11, %v431_v59  ;;  %vm455_vm7 = vweird.f32 %v711_v11 }
 0x1d8   : > { %714 = vrcp.f32 %v432_v14  ;;  %vm456_vm9 = vmor %vm454_vm8, %vm455_vm7  ;;  %v475_v33 = vand.u32 2147483648, %v432_v14  ;;  %vm469_vm11 = vweird.f32 %v432_v14  ;;  %v473_v35 = vand.u32 2147483647, %v432_v14 }
 0x1d9   : > { %v442_v18 = vsel %vm441_vm5, %v707_v60, %v438_v15  ;;  %v451_v19 = vsub.f32 1.0, %v450_v16 }
 0x1da   : > { %v447_v20 = vsel %vm444_vm6, %v446_v17, %v442_v18  ;;  %v476_v38 = vor.u32 1.1754944e-38, %v475_v33  ;;  %vm474_vm14 = vcmp.eq.f32.partialorder %v473_v35, 8.507059e+37 }
 0x1db   : > { %496 = vperm.xlu0 %699, %v447_v20   ;;  %v452_v22 = vmul.f32 %v711_v11, %v451_v19 }
 0x1dd   : > { %v713_v24 = vpop.eup %712  ;;  %v453_v25 = vadd.f32 %v711_v11, %v452_v22 }
 0x1de   : > { %v715_v26 = vpop.eup %714  ;;  %v433_v27 = vadd.f32 1.0, %v713_v24 }
 0x1df   : > { %v457_v29 = vsel %vm456_vm9, %v711_v11, %v453_v25  ;;  %v465_v30 = vmul.f32 %v715_v26, %v432_v14  ;;  %vm470_vm12 = vweird.f32 %v715_v26 }
 0x1e0   : > { %716 = vrcp.f32 %v433_v27  ;;  %v462_v31 = vsel %vm459_vm10, %v461_v28, %v457_v29  ;;  %vm471_vm13 = vmor %vm469_vm11, %vm470_vm12  ;;  %v490_v43 = vand.u32 2147483648, %v433_v27  ;;  %vm484_vm15 = vweird.f32 %v433_v27 }
 0x1e1   : > { %501 = vperm.xlu1 %700, %v462_v31   ;;  %v466_v32 = vsub.f32 1.0, %v465_v30  ;;  %v488_v45 = vand.u32 2147483647, %v433_v27 }
 0x1e2   : > { %v491_v47 = vor.u32 1.1754944e-38, %v490_v43 }
 0x1e3   : > { %v467_v34 = vmul.f32 %v715_v26, %v466_v32  ;;  %vm489_vm2 = vcmp.eq.f32.partialorder %v488_v45, 8.507059e+37 }
 0x1e5   : > { %v468_v36 = vadd.f32 %v715_v26, %v467_v34 }
 0x1e6   : > { %v717_v37 = vpop.eup %716 }
 0x1e7   : > { %v472_v39 = vsel %vm471_vm13, %v715_v26, %v468_v36  ;;  %v480_v40 = vmul.f32 %v717_v37, %v433_v27  ;;  %vm485_vm0 = vweird.f32 %v717_v37 }
 0x1e8   : > { %v477_v41 = vsel %vm474_vm14, %v476_v38, %v472_v39  ;;  %vm486_vm1 = vmor %vm484_vm15, %vm485_vm0 }
 0x1e9   : > { %506 = vperm.xlu2 %701, %v477_v41   ;;  %v481_v42 = vsub.f32 1.0, %v480_v40 }
 0x1eb   : > { %v482_v44 = vmul.f32 %v717_v37, %v481_v42 }
 0x1ed   : > { %v483_v46 = vadd.f32 %v717_v37, %v482_v44 }
 0x1ef   : > { %v487_v48 = vsel %vm486_vm1, %v717_v37, %v483_v46 }
 0x1f0   : > { %v492_v49 = vsel %vm489_vm2, %v491_v47, %v487_v48 }
 0x1f1   : > { %511 = vperm.xlu2 %701, %v492_v49  }
 0x243   : > { %v507_v50 = vpop.permute.xlu2 %506 }
 0x244   : > { %v518_v51 = vmul.f32 %v507_v50, %v951_v2  ;;  %v519_v52 = vmul.f32 %v507_v50, %v955_v4 }
 0x246   : > { %526 = vst [vmem:[%s244_s29 + $0x20] sm:$0xff] %v518_v51 }
 0x247   : > { %527 = vst [vmem:[%s244_s29 + $0x28] sm:$0xff] %v519_v52 }
 0x24b   : > { %v512_v53 = vpop.permute.xlu2 %511 }
 0x24c   : > { %v520_v54 = vmul.f32 %v512_v53, %v947_v0  ;;  %v521_v55 = vmul.f32 %v512_v53, %v949_v1 }
 0x24d   : > { %v497_v56 = vpop.permute.xlu0 %496 }
 0x24e   : > { %528 = vst [vmem:[%s244_s29 + $0x30] sm:$0xff] %v520_v54  ;;  %v514_v57 = vmul.f32 %v497_v56, %v971_v12  ;;  %v515_v58 = vmul.f32 %v497_v56, %v973_v13 }
 0x24f   : > { %529 = vst [vmem:[%s244_s29 + $0x38] sm:$0xff] %v521_v55 }
 0x250   : > { %522 = vst [vmem:[%s244_s29] sm:$0xff] %v514_v57 }
 0x251   : > { %523 = vst [vmem:[%s244_s29 + $0x8] sm:$0xff] %v515_v58 }
 0x253   : > { %v502_v0 = vpop.permute.xlu1 %501 }
 0x254   : > { %v516_v1 = vmul.f32 %v502_v0, %v961_v7  ;;  %v517_v2 = vmul.f32 %v502_v0, %v963_v8 }
 0x256   : > { %524 = vst [vmem:[%s244_s29 + $0x10] sm:$0xff] %v516_v1 }
 0x257   : > { %525 = vst [vmem:[%s244_s29 + $0x18] sm:$0xff] %v517_v2 }
 0x258   : > { %775 = shalt.err (!%p772_p4)
}
 0x259   : > { %s819_s12 = smov 256   ;;  %s820_s25 = smov 16  }
 0x25a   : > { %650 = dma.vmem_to_hbm [thread:$0]  (%p901_p11), %s544_s14, 1024, %s546_s22, %s531_s26, %s819_s12, %s819_s12, %s820_s25  }
 0x25b PF: > { %s560_s29 = sand.u32 1, %s802_s18   ;;  %p1065_p7 = scmp.ge.s32.totalorder %s814_s21, 2 }
 0x25c   : > { %s561_s13 = scalar_lea.sflag [#allocation4], %s560_s29 }
 0x25d   : > { %p657_p5 = pnand %p1065_p7, %p905_p12 }
 0x25f   : > { %p658_p8 = pneg %p657_p5 }
 0x261   : > { %797 = dma.done.wait (%p658_p8), %s561_s13, 1024  }
 0x262   : > { %799 = vsyncadd (%p658_p8), %s561_s13, 4294966272  ;;  %p18_p10 = scmp.ge.s32.totalorder %s876_s24, 4   ;;  %s1066_s18 = smov %s806_s19 }
 0x263   : > { %s1067_s19 = smov %s810_s20  ;;  %s1068_s20 = smov %s888_s27 }
 0x264   : > { %s1069_s21 = smov %s876_s24  ;;  %20 = sbr.rel (!%p18_p10) target bundleno = 5 (0x5), region = 85 }
 0x269   :  { %567 = vsyncpa [#allocation3], 1 }
 0x26a   :  { %569 = vsyncpa [#allocation3 + $0x1], 1 }
 0x26b   :  { %570 = vsyncpa [#allocation4], 1 }
 0x26c   :  { %572 = vsyncpa [#allocation4 + $0x1], 1 }

</bundles_post_ra>
